<compile_context>
chip_gen: v6e
topology: v6e:2x2x1
jax: 0.10.0
libtpu: 0.0.40
codegen_flags: <defaults>
</compile_context>

<pallas_src>
import jax
import jax.numpy as jnp
from jax import lax
from jax.experimental import pallas as pl
from jax.experimental.pallas import tpu as pltpu


def _simtrans_kernel(c_ref, b_ref, o_ref):
    C = c_ref[...]               # (n, n) f32 — grid-invariant, stays resident in VMEM
    Bb = b_ref[...]              # (TB, n, n) block of batch elements
    TB, n, _ = Bb.shape

    # Stage 1: Y[t] = B[t] @ C^T as ONE tall matmul (M = TB*n, K = n, N = n).
    # dot_general contracts B's last axis against C's last axis -> no C.T in-kernel.
    Y = lax.dot_general(
        Bb.reshape(TB * n, n), C,
        dimension_numbers=(((1,), (1,)), ((), ())),
        preferred_element_type=jnp.float32,
    )                                                     # [(t, j), l]

    # Put the remaining contraction index j back into the minor position.
    W = jnp.swapaxes(Y.reshape(TB, n, n), 1, 2)           # [t, l, j]

    # Stage 2: (C @ B[t] @ C^T)^T = (B[t] @ C^T)^T @ C^T, again ONE tall matmul.
    O = lax.dot_general(
        W.reshape(TB * n, n), C,
        dimension_numbers=(((1,), (1,)), ((), ())),
        preferred_element_type=jnp.float32,
    )                                                     # [(t, l), i]

    out = jnp.swapaxes(O.reshape(TB, n, n), 1, 2)         # [t, i, l] = C @ B[t] @ C^T
    o_ref[...] = out.astype(o_ref.dtype)


def learnable_similarity_transform(C, B, *, block_batch=64):
    """Computes C @ B @ C^T for batched B via a Pallas TPU kernel.

    C: (n, n) float32, B: (batch, n, n) float32 -> (batch, n, n) float32
    """
    batch, n, _ = B.shape
    TB = min(block_batch, batch)
    num_blocks = (batch + TB - 1) // TB
    padded = num_blocks * TB
    Bp = B if padded == batch else jnp.pad(
        B, ((0, padded - batch), (0, 0), (0, 0)))

    out = pl.pallas_call(
        _simtrans_kernel,
        out_shape=jax.ShapeDtypeStruct((padded, n, n), B.dtype),
        grid_spec=pltpu.PrefetchScalarGridSpec(
            num_scalar_prefetch=0,
            grid=(num_blocks,),
            in_specs=[
                pl.BlockSpec((n, n), lambda b: (0, 0)),         # C (resident)
                pl.BlockSpec((TB, n, n), lambda b: (b, 0, 0)),  # B block
            ],
            out_specs=pl.BlockSpec((TB, n, n), lambda b: (b, 0, 0)),
        ),
        compiler_params=pltpu.CompilerParams(
            dimension_semantics=("parallel",),       # shards batch steps over v7x's 2 TCs
            vmem_limit_bytes=32 * 1024 * 1024,       # explicit, safe on v5e/v6e/v7x
        ),
    )(C, Bp)
    return out[:batch] if padded != batch else out


# TODO(synk): the orthog=False branch needs torch.linalg.inv(C); matrix inversion
# has no clean Pallas TPU primitive, so only the orthog=True path is implemented.


if __name__ == "__main__":
    key = jax.random.PRNGKey(0)
    k_c, k_b = jax.random.split(key)

    n = 32        # dimension of C (module __init__ arg)
    batch = 2     # batch of B matrices

    # Parameter: nn.Parameter(torch.eye(n)) -> identity init; add a small
    # deterministic perturbation so the transform is non-trivial.
    C = jnp.eye(n, dtype=jnp.float32) + 0.1 * jax.random.normal(
        k_c, (n, n), dtype=jnp.float32)
    B = jax.random.normal(k_b, (batch, n, n), dtype=jnp.float32)

    out = learnable_similarity_transform(C, B)
    out = jax.block_until_ready(out)

    ref = jnp.einsum("ij,bjk,lk->bil", C, B, C)
    assert out.shape == (batch, n, n)
    assert jnp.allclose(out, ref, atol=2e-4, rtol=2e-4), "mismatch vs reference"

    # Secondary check: multi-block grid + batch padding path.
    B2 = jax.random.normal(jax.random.PRNGKey(1), (10, n, n), dtype=jnp.float32)
    out2 = jax.block_until_ready(
        learnable_similarity_transform(C, B2, block_batch=4))
    ref2 = jnp.einsum("ij,bjk,lk->bil", C, B2, C)
    assert out2.shape == B2.shape
    assert jnp.allclose(out2, ref2, atol=2e-4, rtol=2e-4), "mismatch (blocked path)"

    print("KERNEL_OK")
</pallas_src>

<mosaic_0001>
module attributes {stable_mosaic.version = 11 : i64} {
  func.func @_simtrans_kernel(%arg0: i32, %arg1: memref<32x32xf32, #tpu.memory_space<vmem>>, %arg2: memref<2x32x32xf32, #tpu.memory_space<vmem>>, %arg3: memref<2x32x32xf32, #tpu.memory_space<vmem>>) attributes {dimension_semantics = [#tpu.dimension_semantics<parallel>], iteration_bounds = array<i64: 1>, scalar_prefetch = 0 : i64, scratch_operands = 0 : i64, tpu.core_type = #tpu.core_type<tc>, window_params = [{pipeline_mode = #tpu.pipeline_mode<synchronous>, transform_indices = @transform_0, window_bounds = array<i64: 32, 32>}, {transform_indices = @transform_1, window_bounds = array<i64: 2, 32, 32>}, {transform_indices = @transform_2, window_bounds = array<i64: 2, 32, 32>}]} {
    %c0 = arith.constant 0 : index
    %c0_0 = arith.constant 0 : index
    %0 = vector.load %arg1[%c0, %c0_0] : memref<32x32xf32, #tpu.memory_space<vmem>>, vector<32x32xf32>
    %c0_1 = arith.constant 0 : index
    %c0_2 = arith.constant 0 : index
    %c0_3 = arith.constant 0 : index
    %1 = vector.load %arg2[%c0_1, %c0_2, %c0_3] : memref<2x32x32xf32, #tpu.memory_space<vmem>>, vector<2x32x32xf32>
    %2 = vector.shape_cast %1 : vector<2x32x32xf32> to vector<64x32xf32>
    %cst = arith.constant dense<0.000000e+00> : vector<64x32xf32>
    %3 = tpu.matmul %2, %0, %cst {dimension_numbers = #tpu.dot_dimension_numbers<[1], [1], [0], [0], [0, 0, 1, 0], [], []>} : vector<64x32xf32>, vector<32x32xf32>, vector<64x32xf32> -> vector<64x32xf32>
    %4 = vector.shape_cast %3 : vector<64x32xf32> to vector<2x32x32xf32>
    %5 = tpu.transpose %4, [0, 2, 1] : vector<2x32x32xf32> -> vector<2x32x32xf32>
    %6 = vector.shape_cast %5 : vector<2x32x32xf32> to vector<64x32xf32>
    %cst_4 = arith.constant dense<0.000000e+00> : vector<64x32xf32>
    %7 = tpu.matmul %6, %0, %cst_4 {dimension_numbers = #tpu.dot_dimension_numbers<[1], [1], [0], [0], [0, 0, 1, 0], [], []>} : vector<64x32xf32>, vector<32x32xf32>, vector<64x32xf32> -> vector<64x32xf32>
    %8 = vector.shape_cast %7 : vector<64x32xf32> to vector<2x32x32xf32>
    %9 = tpu.transpose %8, [0, 2, 1] : vector<2x32x32xf32> -> vector<2x32x32xf32>
    %c0_5 = arith.constant 0 : index
    %c0_6 = arith.constant 0 : index
    %c0_7 = arith.constant 0 : index
    %10 = vector.load %arg3[%c0_5, %c0_6, %c0_7] : memref<2x32x32xf32, #tpu.memory_space<vmem>>, vector<2x32x32xf32>
    tpu.vector_store %arg3[%c0_5, %c0_6, %c0_7], %9 {strides = array<i32>} : memref<2x32x32xf32, #tpu.memory_space<vmem>>, vector<2x32x32xf32>,
    return
  }
  func.func @transform_0(%arg0: i32) -> (i32, i32) {
    %c0_i32 = arith.constant 0 : i32
    %c0_i32_0 = arith.constant 0 : i32
    %c0_i32_1 = arith.constant 0 : i32
    return %c0_i32, %c0_i32_0 : i32, i32
  }
  func.func @transform_1(%arg0: i32) -> (i32, i32, i32) {
    %c0_i32 = arith.constant 0 : i32
    %c0_i32_0 = arith.constant 0 : i32
    %c0_i32_1 = arith.constant 0 : i32
    return %arg0, %c0_i32, %c0_i32_0 : i32, i32, i32
  }
  func.func @transform_2(%arg0: i32) -> (i32, i32, i32) {
    %c0_i32 = arith.constant 0 : i32
    %c0_i32_0 = arith.constant 0 : i32
    %c0_i32_1 = arith.constant 0 : i32
    return %arg0, %c0_i32, %c0_i32_0 : i32, i32, i32
  }
}

</mosaic_0001>

<bundles_post_ra>
// kernel: tpu_custom_call.1
= control target key start
LH: loop header
LB: loop body
LE: loop exit
PB: predicated region body
PF: predicated region fallthrough
CT: control target
= control target key end

     0   :  { %7 = vsyncpa [#allocation3], 0  ;;  %s715_s0 = inlined_call_operand.hbm [shape: f32[32,32], index: 0, kind: input, shape index: {}]   ;;  %s716_s1 = inlined_call_operand.hbm [shape: f32[2,32,32], index: 1, kind: input, shape index: {}]   ;;  %s717_s2 = inlined_call_operand.hbm [shape: f32[2,32,32], index: 2, kind: output, shape index: {}]  }
   0x1   :  { %8 = vsyncpa [#allocation6], 0 }
   0x2   :  { %9 = vsyncpa [#allocation4], 0  ;;  %s637_s9 = smov [#allocation2]  }
   0x3   :  { %s15_s10 = sshll.u32 %s637_s9, 4  ;;  %s16_s10 = int_to_ptr.vmem [resolvable:$true] %s15_s10 }
   0x4   :  { %s579_s11 = scalar_lea.vmem %s16_s10, 512  ;;  %p584_p1 = scmp.lt.s32.totalorder %s16_s10, %s16_s10 }
   0x5   :  { %p580_p0 = scmp.ne.s32.totalorder %s16_s10, %s579_s11  ;;  %p585_p2 = scmp.lt.s32.totalorder %s579_s11, %s579_s11 }
   0x7   :  { %p586_p3 = por %p585_p2, %p584_p1 }
   0x9   :  { %p587_p4 = pnand %p586_p3, %p580_p0 }
   0xb   :  { %590 = shalt.err (!%p587_p4)
}
   0xc   :  { %s638_s12 = smov 128   ;;  %s639_s13 = smov 8  }
   0xd   :  { %21 = dma.hbm_to_vmem [thread:$0]  %s715_s0, 512, %s16_s10, [#allocation3], %s638_s12, %s638_s12, %s639_s13  }
   0xe   :  { %s640_s16 = smov [#allocation5]  }
   0xf   :  { %s27_s17 = sshll.u32 %s640_s16, 4  ;;  %s28_s17 = int_to_ptr.vmem [resolvable:$true] %s27_s17 }
  0x10   :  { %s599_s18 = scalar_lea.vmem %s28_s17, 1024  ;;  %p604_p6 = scmp.lt.s32.totalorder %s28_s17, %s28_s17 }
  0x11   :  { %p600_p5 = scmp.ne.s32.totalorder %s28_s17, %s599_s18  ;;  %p605_p7 = scmp.lt.s32.totalorder %s599_s18, %s599_s18 }
  0x13   :  { %p606_p8 = por %p605_p7, %p604_p6 }
  0x15   :  { %p607_p9 = pnand %p606_p8, %p600_p5 }
  0x17   :  { %610 = shalt.err (!%p607_p9)
}
  0x18   :  { %33 = dma.hbm_to_vmem [thread:$0]  %s716_s1, 1024, %s28_s17, [#allocation6], %s638_s12, %s638_s12, %s639_s13  }
  0x19   :  { %631 = dma.done.wait [#allocation3], 512  }
  0x1a   :  { %632 = vsyncadd [#allocation3], 4294966784 }
  0x1b   :  { %633 = dma.done.wait [#allocation6], 1024  }
  0x1c   :  { %634 = vsyncadd [#allocation6], 4294966272  ;;  %vm52_vm0 = vcmask 261120   ;;  %v43_v0 = vld [vmem:[#allocation2 + $0x18] sm:$0xff]  ;;  %v42_v1 = vld [vmem:[#allocation2 + $0x10] sm:$0xff]  ;;  %s641_s0 = smov [#allocation7]  }
  0x1d   :  { %525 = vmatprep.subr.msk.mxu0 %vm52_vm0, %v43_v0  ;;  %v44_v2 = vld [vmem:[#allocation5] sm:$0xff]  ;;  %545 = vmatprep.subr.msk.mxu1 %vm52_vm0, %v43_v0  ;;  %v41_v3 = vld [vmem:[#allocation2 + $0x8] sm:$0xff]  ;;  %v46_v6 = vld [vmem:[#allocation5 + $0x10] sm:$0xff]  ;;  %s464_s1 = sshll.u32 %s641_s0, 4  ;;  %s465_s1 = int_to_ptr.vmem [resolvable:$true] %s464_s1 }
  0x1e   :  { %526 = vmatpush3.xpose.msk.msra.mxu0 %vm52_vm0, %v43_v0  ;;  %533 = vmatprep.mubr.msk.f32.mxu0 %vm52_vm0, %v44_v2  ;;  %v40_v4 = vld [vmem:[#allocation2] sm:$0xff]  ;;  %v45_v5 = vld [vmem:[#allocation5 + $0x8] sm:$0xff]  ;;  %v47_v7 = vld [vmem:[#allocation5 + $0x18] sm:$0xff]  ;;  %s611_s21 = scalar_lea.vmem %s465_s1, 1024  ;;  %p616_p11 = scmp.lt.s32.totalorder %s465_s1, %s465_s1 }
  0x1f   :  { %527 = vmatprep.subr.msk.mxu0 %vm52_vm0, %v42_v1  ;;  %546 = vmatpush3.xpose.msk.msra.mxu1 %vm52_vm0, %v43_v0  ;;  %v48_v8 = vld [vmem:[#allocation5 + $0x20] sm:$0xff]  ;;  %v49_v9 = vld [vmem:[#allocation5 + $0x28] sm:$0xff]  ;;  %v50_v10 = vld [vmem:[#allocation5 + $0x30] sm:$0xff]  ;;  %p612_p10 = scmp.ne.s32.totalorder %s465_s1, %s611_s21  ;;  %p617_p12 = scmp.lt.s32.totalorder %s611_s21, %s611_s21 }
  0x20   :  { %547 = vmatprep.subr.msk.mxu1 %vm52_vm0, %v42_v1  ;;  %v51_v11 = vld [vmem:[#allocation5 + $0x38] sm:$0xff] }
  0x21   :  { %p618_p13 = por %p617_p12, %p616_p11 }
  0x22   :  { %528 = vmatpush3.xpose.msk.msra.mxu0 %vm52_vm0, %v42_v1 }
  0x23   :  { %529 = vmatprep.subr.msk.mxu0 %vm52_vm0, %v41_v3  ;;  %548 = vmatpush3.xpose.msk.msra.mxu1 %vm52_vm0, %v42_v1  ;;  %p619_p0 = pnand %p618_p13, %p612_p10 }
  0x24   :  { %549 = vmatprep.subr.msk.mxu1 %vm52_vm0, %v41_v3 }
  0x26   :  { %530 = vmatpush3.xpose.msk.msra.mxu0 %vm52_vm0, %v41_v3 }
  0x27   :  { %531 = vmatprep.subr.msk.mxu0 %vm52_vm0, %v40_v4  ;;  %550 = vmatpush3.xpose.msk.msra.mxu1 %vm52_vm0, %v41_v3 }
  0x28   :  { %551 = vmatprep.subr.msk.mxu1 %vm52_vm0, %v40_v4 }
  0x2a   :  { %532 = vmatpush3.xpose.msk.msra.mxu0 %vm52_vm0, %v40_v4 }
  0x2b   :  { %552 = vmatpush3.xpose.msk.msra.mxu1 %vm52_vm0, %v40_v4 }
  0x2d   :  { %534 = vmatmul.mubr.msk.f32.vlgmr.msra.gmra.mxu0 %vm52_vm0, %v45_v5 }
  0x2e   :  { %536 = vmatprep.mubr.msk.f32.mxu0 %vm52_vm0, %v46_v6 }
  0x31   :  { %537 = vmatmul.mubr.msk.f32.gmra.mxu0 %vm52_vm0, %v47_v7 }
  0x32   :  { %539 = vmatprep.mubr.msk.f32.mxu0 %vm52_vm0, %v48_v8 }
  0x35   :  { %540 = vmatmul.mubr.msk.f32.gmra.mxu0 %vm52_vm0, %v49_v9 }
  0x36   :  { %542 = vmatprep.mubr.msk.f32.mxu0 %vm52_vm0, %v50_v10 }
  0x39   :  { %543 = vmatmul.mubr.msk.f32.gmra.mxu0 %vm52_vm0, %v51_v11 }
  0xed   :  { %v535_v12 = vpop.f32.mrf.mxu0 }
  0xef   :  { %v155_v13 = vpop.f32.mrf.mxu0 }
  0xf0   :  { %194 = vxpose.xlu0.b32.start [1/4] (short) (narrow) %v155_v13, 32 }
  0xf1   :  { %v538_v14 = vpop.f32.mrf.mxu0 }
  0xf3   :  { %v165_v15 = vpop.f32.mrf.mxu0 }
  0xf4   :  { %195 = vxpose.xlu0.b32.cont [2/4] (short) (narrow) %v535_v12, 32 }
  0xf5   :  { %v541_v16 = vpop.f32.mrf.mxu0 }
  0xf7   :  { %v175_v17 = vpop.f32.mrf.mxu0 }
  0xf8   :  { %196 = vxpose.xlu0.b32.cont [3/4] (short) (narrow) %v165_v15, 32  ;;  %226 = vxpose.xlu1.b32.start [1/4] (short) (narrow) %v175_v17, 32 }
  0xf9   :  { %v544_v18 = vpop.f32.mrf.mxu0 }
  0xfb   :  { %v185_v19 = vpop.f32.mrf.mxu0 }
  0xfc   :  { %197 = vxpose.xlu0.b32.end [4/4] (short) (narrow) %v538_v14, 32  ;;  %227 = vxpose.xlu1.b32.cont [2/4] (short) (narrow) %v541_v16, 32 }
 0x100   :  { %228 = vxpose.xlu1.b32.cont [3/4] (short) (narrow) %v185_v19, 32 }
 0x104   :  { %229 = vxpose.xlu1.b32.end [4/4] (short) (narrow) %v544_v18, 32 }
 0x16c   :  { %v210_v20 = vpop.trf.xlu0 }
 0x16d   :  { %553 = vmatprep.mubr.msk.f32.mxu1 %vm52_vm0, %v210_v20 }
 0x170   :  { %v211_v21 = vpop.trf.xlu0 }
 0x171   :  { %554 = vmatmul.mubr.msk.f32.vlgmr.msra.gmra.mxu1 %vm52_vm0, %v211_v21 }
 0x174   :  { %v212_v22 = vpop.trf.xlu0  ;;  %v242_v23 = vpop.trf.xlu1 }
 0x175   :  { %556 = vmatprep.mubr.msk.f32.mxu1 %vm52_vm0, %v212_v22 }
 0x178   :  { %v213_v24 = vpop.trf.xlu0  ;;  %v243_v25 = vpop.trf.xlu1 }
 0x179   :  { %557 = vmatmul.mubr.msk.f32.gmra.mxu1 %vm52_vm0, %v213_v24 }
 0x17a   :  { %559 = vmatprep.mubr.msk.f32.mxu1 %vm52_vm0, %v242_v23 }
 0x17c   :  { %v244_v26 = vpop.trf.xlu1 }
 0x17d   :  { %560 = vmatmul.mubr.msk.f32.gmra.mxu1 %vm52_vm0, %v243_v25 }
 0x17e   :  { %562 = vmatprep.mubr.msk.f32.mxu1 %vm52_vm0, %v244_v26 }
 0x180   :  { %v245_v27 = vpop.trf.xlu1 }
 0x181   :  { %563 = vmatmul.mubr.msk.f32.gmra.mxu1 %vm52_vm0, %v245_v27 }
 0x231   :  { %v555_v28 = vpop.f32.mrf.mxu1 }
 0x233   :  { %v348_v29 = vpop.f32.mrf.mxu1 }
 0x234   :  { %387 = vxpose.xlu0.b32.start [1/4] (short) (narrow) %v348_v29, 32 }
 0x238   :  { %388 = vxpose.xlu0.b32.cont [2/4] (short) (narrow) %v555_v28, 32 }
 0x239   :  { %v558_v30 = vpop.f32.mrf.mxu1 }
 0x23b   :  { %v358_v31 = vpop.f32.mrf.mxu1 }
 0x23c   :  { %389 = vxpose.xlu0.b32.cont [3/4] (short) (narrow) %v358_v31, 32 }
 0x23d   :  { %v561_v32 = vpop.f32.mrf.mxu1 }
 0x23f   :  { %v368_v33 = vpop.f32.mrf.mxu1 }
 0x240   :  { %390 = vxpose.xlu0.b32.end [4/4] (short) (narrow) %v558_v30, 32  ;;  %419 = vxpose.xlu1.b32.start [1/4] (short) (narrow) %v368_v33, 32 }
 0x241   :  { %v564_v34 = vpop.f32.mrf.mxu1 }
 0x243   :  { %v378_v35 = vpop.f32.mrf.mxu1 }
 0x244   :  { %420 = vxpose.xlu1.b32.cont [2/4] (short) (narrow) %v561_v32, 32 }
 0x248   :  { %421 = vxpose.xlu1.b32.cont [3/4] (short) (narrow) %v378_v35, 32 }
 0x24c   :  { %422 = vxpose.xlu1.b32.end [4/4] (short) (narrow) %v564_v34, 32 }
 0x2b0   :  { %v403_v36 = vpop.trf.xlu0 }
 0x2b1   :  { %451 = vst.msk [vmem:[#allocation7] sm:$0xff] %vm52_vm0, %v403_v36 }
 0x2b4   :  { %v404_v37 = vpop.trf.xlu0 }
 0x2b5   :  { %452 = vst.msk [vmem:[#allocation7 + $0x8] sm:$0xff] %vm52_vm0, %v404_v37 }
 0x2b8   :  { %v405_v38 = vpop.trf.xlu0 }
 0x2b9   :  { %453 = vst.msk [vmem:[#allocation7 + $0x10] sm:$0xff] %vm52_vm0, %v405_v38 }
 0x2bc   :  { %v435_v39 = vpop.trf.xlu1  ;;  %v406_v40 = vpop.trf.xlu0 }
 0x2bd   :  { %455 = vst.msk [vmem:[#allocation7 + $0x20] sm:$0xff] %vm52_vm0, %v435_v39  ;;  %454 = vst.msk [vmem:[#allocation7 + $0x18] sm:$0xff] %vm52_vm0, %v406_v40 }
 0x2c0   :  { %v436_v41 = vpop.trf.xlu1 }
 0x2c1   :  { %456 = vst.msk [vmem:[#allocation7 + $0x28] sm:$0xff] %vm52_vm0, %v436_v41 }
 0x2c4   :  { %v437_v42 = vpop.trf.xlu1 }
 0x2c5   :  { %457 = vst.msk [vmem:[#allocation7 + $0x30] sm:$0xff] %vm52_vm0, %v437_v42 }
 0x2c8   :  { %v438_v43 = vpop.trf.xlu1 }
 0x2c9   :  { %458 = vst.msk [vmem:[#allocation7 + $0x38] sm:$0xff] %vm52_vm0, %v438_v43 }
 0x2ca   :  { %622 = shalt.err (!%p619_p0)
}
 0x2cb   :  { %470 = dma.vmem_to_hbm [thread:$0]  %s465_s1, 1024, %s717_s2, [#allocation4], %s638_s12, %s638_s12, %s639_s13  }
 0x2cc   :  { %635 = dma.done.wait [#allocation4], 1024  }
 0x2cd   :  { %636 = vsyncadd [#allocation4], 4294966272 }
 0x2ce   :  { %474 = vsyncpa [#allocation3], 1 }
 0x2cf   :  { %475 = vsyncpa [#allocation6], 1 }
 0x2d0   :  { %476 = vsyncpa [#allocation4], 1 }

</bundles_post_ra>
